<compile_context>
chip_gen: v7x
topology: tpu7x:2x2x1
jax: 0.10.0
libtpu: 0.0.40
codegen_flags: <defaults>
</compile_context>

<pallas_src>
import functools

import jax
import jax.numpy as jnp
from jax.experimental import pallas as pl
from jax.experimental.pallas import tpu as pltpu

# Logical model sizes (PyTorch module) and lane-aligned padded hidden sizes.
D_IN = 256
H1, H2, D_OUT = 600, 300, 16
H1_P, H2_P = 640, 384  # hidden dims padded to multiples of 128 lanes


def mlp_kernel(x_ref, w1_ref, b1_ref, w2_ref, b2_ref, w3_ref, b3_ref, o_ref):
    # One batch tile per grid step; whole MLP fused, accumulation in f32.
    x = x_ref[...].astype(jnp.bfloat16)

    h1 = jnp.dot(x, w1_ref[...], preferred_element_type=jnp.float32) + b1_ref[...]
    h1 = jnp.maximum(h1, 0.0).astype(jnp.bfloat16)

    h2 = jnp.dot(h1, w2_ref[...], preferred_element_type=jnp.float32) + b2_ref[...]
    h2 = jnp.maximum(h2, 0.0).astype(jnp.bfloat16)

    logits = jnp.dot(h2, w3_ref[...], preferred_element_type=jnp.float32) + b3_ref[...]

    # Exact sigmoid: exp on the EUP, divide on the VPU -- negligible cost here.
    o_ref[...] = 1.0 / (1.0 + jnp.exp(-logits))


def _round_up(v, m):
    return ((v + m - 1) // m) * m


@functools.partial(jax.jit, static_argnames=("block_b",))
def neural_network_forward(x, params, block_b: int = 2048):
    """x: (B, 256) f32. Returns (B, 16) f32 = sigmoid(MLP(x))."""
    w1, b1, w2, b2, w3, b3 = params
    B = x.shape[0]

    # Batch tile: <= block_b rows, sublane-aligned (8), and no bigger than
    # ceil(B/2) so that whenever B permits there are >= 2 grid steps for the
    # v7x megacore to shard across its two TensorCores.
    TB = min(block_b, max(8, _round_up(pl.cdiv(B, 2), 8)))
    grid = (pl.cdiv(B, TB),)  # ragged final block handled by Pallas masking

    x_spec = pl.BlockSpec((TB, D_IN), lambda i: (i, 0))
    out_spec = pl.BlockSpec((TB, D_OUT), lambda i: (i, 0))
    # Weights/biases: constant index_map -> VMEM-resident across grid steps.
    w1_spec = pl.BlockSpec((D_IN, H1_P), lambda i: (0, 0))
    b1_spec = pl.BlockSpec((1, H1_P), lambda i: (0, 0))
    w2_spec = pl.BlockSpec((H1_P, H2_P), lambda i: (0, 0))
    b2_spec = pl.BlockSpec((1, H2_P), lambda i: (0, 0))
    w3_spec = pl.BlockSpec((H2_P, D_OUT), lambda i: (0, 0))
    b3_spec = pl.BlockSpec((1, D_OUT), lambda i: (0, 0))

    flops = 2 * B * (D_IN * H1_P + H1_P * H2_P + H2_P * D_OUT)
    bytes_accessed = (
        B * D_IN * 4                                            # x in (f32)
        + B * D_OUT * 4                                         # out (f32, 16 cols only)
        + (D_IN * H1_P + H1_P * H2_P + H2_P * D_OUT) * 2        # bf16 weights
        + (H1_P + H2_P + D_OUT) * 4                             # f32 biases
    )
    cost = pl.CostEstimate(
        flops=flops, transcendentals=B * D_OUT, bytes_accessed=bytes_accessed
    )

    out = pl.pallas_call(
        mlp_kernel,
        out_shape=jax.ShapeDtypeStruct((B, D_OUT), jnp.float32),
        grid=grid,
        in_specs=[x_spec, w1_spec, b1_spec, w2_spec, b2_spec, w3_spec, b3_spec],
        out_specs=out_spec,
        compiler_params=pltpu.CompilerParams(
            dimension_semantics=("parallel",),
            vmem_limit_bytes=48 << 20,  # fits TB=2048 (~20 MiB) incl. on v7x's 64 MiB
        ),
        cost_estimate=cost,
    )(x, w1, b1, w2, b2, w3, b3)

    return out


def init_params(key):
    """Deterministic init mirroring nn.Linear(256,600)/(600,300)/(300,16).

    Weights are stored as (in, out) for x @ W, zero-padded on the hidden dims
    to lane-aligned sizes (zero padding is inert through ReLU / the zero rows
    of the next weight), and cast to bf16. Biases stay f32, shape (1, dim).
    """
    k1, k2, k3, k4, k5, k6 = jax.random.split(key, 6)

    def uniform_init(k, shape, fan_in):
        bound = 1.0 / jnp.sqrt(fan_in)
        return jax.random.uniform(k, shape, jnp.float32, -bound, bound)

    def pad_to(a, shape):
        return jnp.pad(a, [(0, t - s) for s, t in zip(a.shape, shape)])

    w1 = pad_to(uniform_init(k1, (D_IN, H1), D_IN), (D_IN, H1_P)).astype(jnp.bfloat16)
    b1 = pad_to(uniform_init(k2, (1, H1), D_IN), (1, H1_P))
    w2 = pad_to(uniform_init(k3, (H1, H2), H1), (H1_P, H2_P)).astype(jnp.bfloat16)
    b2 = pad_to(uniform_init(k4, (1, H2), H1), (1, H2_P))
    w3 = pad_to(uniform_init(k5, (H2, D_OUT), H2), (H2_P, D_OUT)).astype(jnp.bfloat16)
    b3 = uniform_init(k6, (1, D_OUT), H2)
    return (w1, b1, w2, b2, w3, b3)


def reference_forward(x, params):
    # Pure-JAX reference mirroring the kernel's numerics (bf16 operands,
    # f32 accumulation, exact sigmoid).
    w1, b1, w2, b2, w3, b3 = params
    xb = x.astype(jnp.bfloat16)
    h1 = jnp.maximum(jnp.dot(xb, w1, preferred_element_type=jnp.float32) + b1, 0.0)
    h1 = h1.astype(jnp.bfloat16)
    h2 = jnp.maximum(jnp.dot(h1, w2, preferred_element_type=jnp.float32) + b2, 0.0)
    h2 = h2.astype(jnp.bfloat16)
    logits = jnp.dot(h2, w3, preferred_element_type=jnp.float32) + b3
    return jax.nn.sigmoid(logits)


if __name__ == "__main__":
    key = jax.random.PRNGKey(0)
    pkey, xkey = jax.random.split(key)
    params = init_params(pkey)

    B = 8  # small example batch; kernel tiles/grids for any B
    x = jax.random.normal(xkey, (B, D_IN), jnp.float32)

    out = neural_network_forward(x, params)
    out = jax.block_until_ready(out)

    ref = reference_forward(x, params)
    assert out.shape == (B, D_OUT)
    # bf16 matmul operands -> slightly looser tolerance vs the XLA reference
    assert jnp.allclose(out, ref, atol=1e-2, rtol=1e-2)

    print("KERNEL_OK")
</pallas_src>

<mosaic_0001>
module attributes {stable_mosaic.version = 11 : i64} {
  func.func @mlp_kernel(%arg0: i32, %arg1: memref<8x256xf32, #tpu.memory_space<vmem>>, %arg2: memref<256x640xbf16, #tpu.memory_space<vmem>>, %arg3: memref<1x640xf32, #tpu.memory_space<vmem>>, %arg4: memref<640x384xbf16, #tpu.memory_space<vmem>>, %arg5: memref<1x384xf32, #tpu.memory_space<vmem>>, %arg6: memref<384x16xbf16, #tpu.memory_space<vmem>>, %arg7: memref<1x16xf32, #tpu.memory_space<vmem>>, %arg8: memref<8x16xf32, #tpu.memory_space<vmem>>) attributes {dimension_semantics = [#tpu.dimension_semantics<parallel>], iteration_bounds = array<i64: 1>, scalar_prefetch = 0 : i64, scratch_operands = 0 : i64, tpu.core_type = #tpu.core_type<tc>, window_params = [{transform_indices = @transform_0, window_bounds = array<i64: 8, 256>}, {pipeline_mode = #tpu.pipeline_mode<synchronous>, transform_indices = @transform_1, window_bounds = array<i64: 256, 640>}, {pipeline_mode = #tpu.pipeline_mode<synchronous>, transform_indices = @transform_2, window_bounds = array<i64: 1, 640>}, {pipeline_mode = #tpu.pipeline_mode<synchronous>, transform_indices = @transform_3, window_bounds = array<i64: 640, 384>}, {pipeline_mode = #tpu.pipeline_mode<synchronous>, transform_indices = @transform_4, window_bounds = array<i64: 1, 384>}, {pipeline_mode = #tpu.pipeline_mode<synchronous>, transform_indices = @transform_5, window_bounds = array<i64: 384, 16>}, {pipeline_mode = #tpu.pipeline_mode<synchronous>, transform_indices = @transform_6, window_bounds = array<i64: 1, 16>}, {transform_indices = @transform_7, window_bounds = array<i64: 8, 16>}]} {
    %c0 = arith.constant 0 : index
    %c0_0 = arith.constant 0 : index
    %0 = vector.load %arg1[%c0, %c0_0] : memref<8x256xf32, #tpu.memory_space<vmem>>, vector<8x256xf32>
    %1 = arith.truncf %0 : vector<8x256xf32> to vector<8x256xbf16>
    %c0_1 = arith.constant 0 : index
    %c0_2 = arith.constant 0 : index
    %2 = vector.load %arg2[%c0_1, %c0_2] : memref<256x640xbf16, #tpu.memory_space<vmem>>, vector<256x640xbf16>
    %cst = arith.constant dense<0.000000e+00> : vector<8x640xf32>
    %3 = tpu.matmul %1, %2, %cst {dimension_numbers = #tpu.dot_dimension_numbers<[1], [0], [0], [1], [0, 0, 1, 1], [], []>} : vector<8x256xbf16>, vector<256x640xbf16>, vector<8x640xf32> -> vector<8x640xf32>
    %c0_3 = arith.constant 0 : index
    %c0_4 = arith.constant 0 : index
    %4 = vector.load %arg3[%c0_3, %c0_4] : memref<1x640xf32, #tpu.memory_space<vmem>>, vector<1x640xf32>
    %5 = vector.broadcast %4 : vector<1x640xf32> to vector<8x640xf32>
    %6 = arith.addf %3, %5 : vector<8x640xf32>
    %cst_5 = arith.constant 0.000000e+00 : f32
    %7 = vector.broadcast %cst_5 : f32 to vector<8x640xf32>
    %8 = arith.maximumf %6, %7 : vector<8x640xf32>
    %9 = arith.truncf %8 : vector<8x640xf32> to vector<8x640xbf16>
    %c0_6 = arith.constant 0 : index
    %c0_7 = arith.constant 0 : index
    %10 = vector.load %arg4[%c0_6, %c0_7] : memref<640x384xbf16, #tpu.memory_space<vmem>>, vector<640x384xbf16>
    %cst_8 = arith.constant dense<0.000000e+00> : vector<8x384xf32>
    %11 = tpu.matmul %9, %10, %cst_8 {dimension_numbers = #tpu.dot_dimension_numbers<[1], [0], [0], [1], [0, 0, 1, 1], [], []>} : vector<8x640xbf16>, vector<640x384xbf16>, vector<8x384xf32> -> vector<8x384xf32>
    %c0_9 = arith.constant 0 : index
    %c0_10 = arith.constant 0 : index
    %12 = vector.load %arg5[%c0_9, %c0_10] : memref<1x384xf32, #tpu.memory_space<vmem>>, vector<1x384xf32>
    %13 = vector.broadcast %12 : vector<1x384xf32> to vector<8x384xf32>
    %14 = arith.addf %11, %13 : vector<8x384xf32>
    %cst_11 = arith.constant 0.000000e+00 : f32
    %15 = vector.broadcast %cst_11 : f32 to vector<8x384xf32>
    %16 = arith.maximumf %14, %15 : vector<8x384xf32>
    %17 = arith.truncf %16 : vector<8x384xf32> to vector<8x384xbf16>
    %c0_12 = arith.constant 0 : index
    %c0_13 = arith.constant 0 : index
    %18 = vector.load %arg6[%c0_12, %c0_13] : memref<384x16xbf16, #tpu.memory_space<vmem>>, vector<384x16xbf16>
    %cst_14 = arith.constant dense<0.000000e+00> : vector<8x16xf32>
    %19 = tpu.matmul %17, %18, %cst_14 {dimension_numbers = #tpu.dot_dimension_numbers<[1], [0], [0], [1], [0, 0, 1, 1], [], []>} : vector<8x384xbf16>, vector<384x16xbf16>, vector<8x16xf32> -> vector<8x16xf32>
    %c0_15 = arith.constant 0 : index
    %c0_16 = arith.constant 0 : index
    %20 = vector.load %arg7[%c0_15, %c0_16] : memref<1x16xf32, #tpu.memory_space<vmem>>, vector<1x16xf32>
    %21 = vector.broadcast %20 : vector<1x16xf32> to vector<8x16xf32>
    %22 = arith.addf %19, %21 : vector<8x16xf32>
    %cst_17 = arith.constant 0.000000e+00 : f32
    %23 = vector.broadcast %cst_17 : f32 to vector<8x16xf32>
    %24 = arith.subf %23, %22 : vector<8x16xf32>
    %25 = math.exp %24 : vector<8x16xf32>
    %cst_18 = arith.constant 1.000000e+00 : f32
    %26 = vector.broadcast %cst_18 : f32 to vector<8x16xf32>
    %27 = arith.addf %26, %25 : vector<8x16xf32>
    %cst_19 = arith.constant 1.000000e+00 : f32
    %28 = vector.broadcast %cst_19 : f32 to vector<8x16xf32>
    %29 = arith.divf %28, %27 : vector<8x16xf32>
    %c0_20 = arith.constant 0 : index
    %c0_21 = arith.constant 0 : index
    %30 = vector.load %arg8[%c0_20, %c0_21] : memref<8x16xf32, #tpu.memory_space<vmem>>, vector<8x16xf32>
    tpu.vector_store %arg8[%c0_20, %c0_21], %29 {strides = array<i32>} : memref<8x16xf32, #tpu.memory_space<vmem>>, vector<8x16xf32>,
    return
  }
  func.func @transform_0(%arg0: i32) -> (i32, i32) {
    %c0_i32 = arith.constant 0 : i32
    %c0_i32_0 = arith.constant 0 : i32
    return %arg0, %c0_i32 : i32, i32
  }
  func.func @transform_1(%arg0: i32) -> (i32, i32) {
    %c0_i32 = arith.constant 0 : i32
    %c0_i32_0 = arith.constant 0 : i32
    %c0_i32_1 = arith.constant 0 : i32
    return %c0_i32, %c0_i32_0 : i32, i32
  }
  func.func @transform_2(%arg0: i32) -> (i32, i32) {
    %c0_i32 = arith.constant 0 : i32
    %c0_i32_0 = arith.constant 0 : i32
    %c0_i32_1 = arith.constant 0 : i32
    return %c0_i32, %c0_i32_0 : i32, i32
  }
  func.func @transform_3(%arg0: i32) -> (i32, i32) {
    %c0_i32 = arith.constant 0 : i32
    %c0_i32_0 = arith.constant 0 : i32
    %c0_i32_1 = arith.constant 0 : i32
    return %c0_i32, %c0_i32_0 : i32, i32
  }
  func.func @transform_4(%arg0: i32) -> (i32, i32) {
    %c0_i32 = arith.constant 0 : i32
    %c0_i32_0 = arith.constant 0 : i32
    %c0_i32_1 = arith.constant 0 : i32
    return %c0_i32, %c0_i32_0 : i32, i32
  }
  func.func @transform_5(%arg0: i32) -> (i32, i32) {
    %c0_i32 = arith.constant 0 : i32
    %c0_i32_0 = arith.constant 0 : i32
    %c0_i32_1 = arith.constant 0 : i32
    return %c0_i32, %c0_i32_0 : i32, i32
  }
  func.func @transform_6(%arg0: i32) -> (i32, i32) {
    %c0_i32 = arith.constant 0 : i32
    %c0_i32_0 = arith.constant 0 : i32
    %c0_i32_1 = arith.constant 0 : i32
    return %c0_i32, %c0_i32_0 : i32, i32
  }
  func.func @transform_7(%arg0: i32) -> (i32, i32) {
    %c0_i32 = arith.constant 0 : i32
    %c0_i32_0 = arith.constant 0 : i32
    return %arg0, %c0_i32 : i32, i32
  }
}

</mosaic_0001>

<bundles_post_ra>
// kernel: neural_network_forward.1
= control target key start
LH: loop header
LB: loop body
LE: loop exit
PB: predicated region body
PF: predicated region fallthrough
CT: control target
= control target key end

     0   :  { %12 = vsyncpa [#allocation3], 0  ;;  %s3096_s0 = inlined_call_operand.vmem [shape: f32[8,256], index: 0, kind: input, shape index: {}]   ;;  %s3097_s1 = inlined_call_operand.hbm [shape: bf16[256,640], index: 1, kind: input, shape index: {}]   ;;  %s3098_s2 = inlined_call_operand.vmem [shape: f32[1,640], index: 2, kind: input, shape index: {}]   ;;  %s3099_s3 = inlined_call_operand.hbm [shape: bf16[640,384], index: 3, kind: input, shape index: {}]   ;;  %s3100_s4 = inlined_call_operand.vmem [shape: f32[1,384], index: 4, kind: input, shape index: {}]   ;;  %s3101_s5 = inlined_call_operand.vmem [shape: bf16[384,16], index: 5, kind: input, shape index: {}]   ;;  %s3102_s6 = inlined_call_operand.vmem [shape: f32[1,16], index: 6, kind: input, shape index: {}]   ;;  %s3103_s7 = inlined_call_operand.hbm [shape: f32[8,16], index: 7, kind: output, shape index: {}]  }
   0x1   :  { %13 = vsyncpa [#allocation6], 0 }
   0x2   :  { %14 = vsyncpa [#allocation4], 0  ;;  %s2863_s24 = smov [#allocation2]   ;;  %s2791_s28 = scalar_lea.hbm %s3097_s1, 10240 }
   0x3   :  { %s22_s25 = sshll.u32 %s2863_s24, 4  ;;  %p2792_p0 = scmp.ne.s32.totalorder %s3097_s1, %s2791_s28  ;;  %s23_s25 = int_to_ptr.vmem [resolvable:$true] %s22_s25 }
   0x4   :  { %p2795_p1 = scmp.lt.u32.totalorder %s2791_s28, %s3097_s1 }
   0x6   :  { %p2797_p2 = pnand %p2795_p1, %p2792_p0 }
   0x8   :  { %2800 = shalt.err (!%p2797_p2)
}
   0x9   :  { %s2801_s10 = scalar_lea.vmem %s23_s25, 10240  ;;  %p2806_p4 = scmp.lt.s32.totalorder %s23_s25, %s23_s25 }
   0xa   :  { %p2802_p3 = scmp.ne.s32.totalorder %s23_s25, %s2801_s10  ;;  %p2807_p5 = scmp.lt.s32.totalorder %s2801_s10, %s2801_s10 }
   0xc   :  { %p2808_p6 = por %p2807_p5, %p2806_p4 }
   0xe   :  { %p2809_p7 = pnand %p2808_p6, %p2802_p3 }
  0x10   :  { %2812 = shalt.err (!%p2809_p7)
}
  0x11   :  { %s2864_s11 = smov 320   ;;  %s2865_s12 = smov 20  }
  0x12   :  { %28 = dma.hbm_to_vmem [thread:$0]  %s3097_s1, 10240, %s23_s25, [#allocation3], %s2864_s11, %s2864_s11, %s2865_s12  }
  0x13   :  { %s2866_s15 = smov [#allocation5]   ;;  %s2813_s19 = scalar_lea.hbm %s3099_s3, 15360 }
  0x14   :  { %s36_s16 = sshll.u32 %s2866_s15, 4  ;;  %p2814_p8 = scmp.ne.s32.totalorder %s3099_s3, %s2813_s19  ;;  %s37_s16 = int_to_ptr.vmem [resolvable:$true] %s36_s16 }
  0x15   :  { %p2817_p9 = scmp.lt.u32.totalorder %s2813_s19, %s3099_s3 }
  0x17   :  { %p2819_p10 = pnand %p2817_p9, %p2814_p8 }
  0x19   :  { %2822 = shalt.err (!%p2819_p10)
}
  0x1a   :  { %s2823_s24 = scalar_lea.vmem %s37_s16, 15360  ;;  %p2828_p12 = scmp.lt.s32.totalorder %s37_s16, %s37_s16 }
  0x1b   :  { %p2824_p11 = scmp.ne.s32.totalorder %s37_s16, %s2823_s24  ;;  %p2829_p13 = scmp.lt.s32.totalorder %s2823_s24, %s2823_s24 }
  0x1d   :  { %p2830_p0 = por %p2829_p13, %p2828_p12 }
  0x1f   :  { %p2831_p1 = pnand %p2830_p0, %p2824_p11 }
  0x21   :  { %2834 = shalt.err (!%p2831_p1)
}
  0x22   :  { %s2867_s1 = smov 192   ;;  %s2868_s25 = smov 12  }
  0x23   :  { %42 = dma.hbm_to_vmem [thread:$0]  %s3099_s3, 15360, %s37_s16, [#allocation6], %s2867_s1, %s2867_s1, %s2868_s25  }
  0x24   :  { %2857 = dma.done.wait [#allocation3], 10240  }
  0x25   :  { %2858 = vsyncadd [#allocation3], 4294957056 }
  0x26   :  { %2859 = dma.done.wait [#allocation6], 15360  }
  0x27   :  { %2860 = vsyncadd [#allocation6], 4294951936  ;;  %v2491_v0 = vld [vmem:[#allocation2 + $0x4] ss:$20 sps:$4 sm:$0xff]   ;;  %v2493_v1 = vld [vmem:[#allocation2] ss:$20 sps:$4 sm:$0xff]  }
  0x28   :  { %599 = vmatprep.subr.bf16.mxu0 %v2491_v0  ;;  %v2494_v2 = vld [vmem:[#allocation2 + $0x2c] ss:$20 sps:$4 sm:$0xff]   ;;  %v2496_v3 = vld [vmem:[#allocation2 + $0x28] ss:$20 sps:$4 sm:$0xff]   ;;  %v2499_v5 = vld [vmem:[#allocation2 + $0x50] ss:$20 sps:$4 sm:$0xff]  }
  0x29   :  { %600 = vmatpush1.bf16.msra.mxu0 %v2493_v1  ;;  %v2497_v4 = vld [vmem:[#allocation2 + $0x54] ss:$20 sps:$4 sm:$0xff]   ;;  %v2500_v6 = vld [vmem:[#allocation2 + $0x7c] ss:$20 sps:$4 sm:$0xff]   ;;  %v2502_v7 = vld [vmem:[#allocation2 + $0x78] ss:$20 sps:$4 sm:$0xff]  }
  0x2a   :  { %601 = vmatprep.subr.bf16.mxu0 %v2494_v2  ;;  %v2515_v8 = vld [vmem:[#allocation2 + $0xc] ss:$20 sps:$4 sm:$0xff]   ;;  %v2503_v9 = vld [vmem:[#allocation2 + $0xa4] ss:$20 sps:$4 sm:$0xff]   ;;  %v2519_v10 = vld [vmem:[#allocation2 + $0x8] ss:$20 sps:$4 sm:$0xff]  }
  0x2b   :  { %640 = vmatprep.subr.bf16.mxu1 %v2515_v8  ;;  %v2521_v11 = vld [vmem:[#allocation2 + $0x34] ss:$20 sps:$4 sm:$0xff]   ;;  %v2506_v13 = vld [vmem:[#allocation2 + $0xcc] ss:$20 sps:$4 sm:$0xff]   ;;  %v2525_v14 = vld [vmem:[#allocation2 + $0x30] ss:$20 sps:$4 sm:$0xff]  }
  0x2c   :  { %641 = vmatpush1.bf16.msra.mxu1 %v2519_v10  ;;  %v2505_v12 = vld [vmem:[#allocation2 + $0xa0] ss:$20 sps:$4 sm:$0xff]   ;;  %v2527_v15 = vld [vmem:[#allocation2 + $0x5c] ss:$20 sps:$4 sm:$0xff]   ;;  %v2531_v17 = vld [vmem:[#allocation2 + $0x58] ss:$20 sps:$4 sm:$0xff]  }
  0x2d   :  { %602 = vmatpush1.bf16.msra.mxu0 %v2496_v3  ;;  %642 = vmatprep.subr.bf16.mxu1 %v2521_v11  ;;  %v2508_v16 = vld [vmem:[#allocation2 + $0xc8] ss:$20 sps:$4 sm:$0xff]   ;;  %v2533_v18 = vld [vmem:[#allocation2 + $0x84] ss:$20 sps:$4 sm:$0xff]   ;;  %v2537_v20 = vld [vmem:[#allocation2 + $0x80] ss:$20 sps:$4 sm:$0xff]  }
  0x2e   :  { %603 = vmatprep.subr.bf16.mxu0 %v2497_v4  ;;  %v2509_v19 = vld [vmem:[#allocation2 + $0xf4] ss:$20 sps:$4 sm:$0xff]   ;;  %v2511_v21 = vld [vmem:[#allocation2 + $0xf0] ss:$20 sps:$4 sm:$0xff]   ;;  %v2539_v22 = vld [vmem:[#allocation2 + $0xac] ss:$20 sps:$4 sm:$0xff]  }
  0x2f   :  { %v2512_v23 = vld [vmem:[#allocation2 + $0x11c] ss:$20 sps:$4 sm:$0xff]   ;;  %v2514_v24 = vld [vmem:[#allocation2 + $0x118] ss:$20 sps:$4 sm:$0xff]   ;;  %v2545_v26 = vld [vmem:[#allocation2 + $0xd4] ss:$20 sps:$4 sm:$0xff]  }
  0x30   :  { %643 = vmatpush1.bf16.msra.mxu1 %v2525_v14  ;;  %v2543_v25 = vld [vmem:[#allocation2 + $0xa8] ss:$20 sps:$4 sm:$0xff]   ;;  %v2517_v27 = vld [vmem:[#allocation2 + $0x144] ss:$20 sps:$4 sm:$0xff]   ;;  %v2520_v29 = vld [vmem:[#allocation2 + $0x140] ss:$20 sps:$4 sm:$0xff]  }
  0x31   :  { %604 = vmatpush1.bf16.msra.mxu0 %v2499_v5  ;;  %644 = vmatprep.subr.bf16.mxu1 %v2527_v15  ;;  %v2549_v28 = vld [vmem:[#allocation2 + $0xd0] ss:$20 sps:$4 sm:$0xff]   ;;  %v2523_v30 = vld [vmem:[#allocation2 + $0x16c] ss:$20 sps:$4 sm:$0xff]   ;;  %v2526_v33 = vld [vmem:[#allocation2 + $0x168] ss:$20 sps:$4 sm:$0xff]  }
  0x32   :  { %605 = vmatprep.subr.bf16.mxu0 %v2500_v6  ;;  %v2551_v31 = vld [vmem:[#allocation2 + $0xfc] ss:$20 sps:$4 sm:$0xff]   ;;  %v57_v32 = vld [vmem:[%s3096_s0 + $0x8] sm:$0xff]  ;;  %v2557_v36 = vld [vmem:[#allocation2 + $0x124] ss:$20 sps:$4 sm:$0xff]   ;;  %vm2870_vm0 = vmmov 0  }
  0x33   :  { %v2940_v34 = vpack.c.bf16 %v57_v32, %v57_v32  ;;  %v2555_v35 = vld [vmem:[#allocation2 + $0xf8] ss:$20 sps:$4 sm:$0xff]   ;;  %v2529_v37 = vld [vmem:[#allocation2 + $0x194] ss:$20 sps:$4 sm:$0xff]   ;;  %v2532_v38 = vld [vmem:[#allocation2 + $0x190] ss:$20 sps:$4 sm:$0xff]  }
  0x34   :  { %645 = vmatpush1.bf16.msra.mxu1 %v2531_v17  ;;  %v2561_v39 = vld [vmem:[#allocation2 + $0x120] ss:$20 sps:$4 sm:$0xff]   ;;  %v2535_v41 = vld [vmem:[#allocation2 + $0x1bc] ss:$20 sps:$4 sm:$0xff]   ;;  %v2538_v42 = vld [vmem:[#allocation2 + $0x1b8] ss:$20 sps:$4 sm:$0xff]  }
  0x35   :  { %606 = vmatpush1.bf16.msra.mxu0 %v2502_v7  ;;  %646 = vmatprep.subr.bf16.mxu1 %v2533_v18  ;;  %v2563_v40 = vld [vmem:[#allocation2 + $0x14c] ss:$20 sps:$4 sm:$0xff]   ;;  %v2565_v43 = vld [vmem:[#allocation2 + $0x148] ss:$20 sps:$4 sm:$0xff]   ;;  %v2541_v45 = vld [vmem:[#allocation2 + $0x1e4] ss:$20 sps:$4 sm:$0xff]  }
  0x36   :  { %607 = vmatprep.subr.bf16.mxu0 %v2503_v9  ;;  %631 = vmatprep.mubr.bf16.mxu0 %v2940_v34  ;;  %v2566_v44 = vld [vmem:[#allocation2 + $0x174] ss:$20 sps:$4 sm:$0xff]   ;;  %v2568_v47 = vld [vmem:[#allocation2 + $0x170] ss:$20 sps:$4 sm:$0xff]   ;;  %v2547_v49 = vld [vmem:[#allocation2 + $0x20c] ss:$20 sps:$4 sm:$0xff]  }
  0x37   :  { %672 = vmatprep.mubr.bf16.mxu1 %v2940_v34  ;;  %v2544_v46 = vld [vmem:[#allocation2 + $0x1e0] ss:$20 sps:$4 sm:$0xff]   ;;  %v2569_v48 = vld [vmem:[#allocation2 + $0x19c] ss:$20 sps:$4 sm:$0xff]   ;;  %v2571_v51 = vld [vmem:[#allocation2 + $0x198] ss:$20 sps:$4 sm:$0xff]  }
  0x38   :  { %647 = vmatpush1.bf16.msra.mxu1 %v2537_v20  ;;  %v2550_v50 = vld [vmem:[#allocation2 + $0x208] ss:$20 sps:$4 sm:$0xff]   ;;  %v2572_v52 = vld [vmem:[#allocation2 + $0x1c4] ss:$20 sps:$4 sm:$0xff]   ;;  %v2574_v55 = vld [vmem:[#allocation2 + $0x1c0] ss:$20 sps:$4 sm:$0xff]  }
  0x39   :  { %608 = vmatpush1.bf16.msra.mxu0 %v2505_v12  ;;  %648 = vmatprep.subr.bf16.mxu1 %v2539_v22  ;;  %v2553_v53 = vld [vmem:[#allocation2 + $0x234] ss:$20 sps:$4 sm:$0xff]   ;;  %v2556_v54 = vld [vmem:[#allocation2 + $0x230] ss:$20 sps:$4 sm:$0xff]   ;;  %v2575_v56 = vld [vmem:[#allocation2 + $0x1ec] ss:$20 sps:$4 sm:$0xff]  }
  0x3a   :  { %609 = vmatprep.subr.bf16.mxu0 %v2506_v13  ;;  %v2559_v57 = vld [vmem:[#allocation2 + $0x25c] ss:$20 sps:$4 sm:$0xff]   ;;  %v2562_v58 = vld [vmem:[#allocation2 + $0x258] ss:$20 sps:$4 sm:$0xff]   ;;  %v56_v59 = vld [vmem:[%s3096_s0] sm:$0xff]  ;;  %vm2082_vm1 = vcmask 130048  }
  0x3b   :  { %v2577_v60 = vld [vmem:[#allocation2 + $0x1e8] ss:$20 sps:$4 sm:$0xff]   ;;  %v2587_v62 = vld [vmem:[#allocation2 + $0x150] ss:$20 sps:$4 sm:$0xff]   ;;  %v2947_v0 = vpack.c.bf16 %v56_v59, %v56_v59  ;;  %v2589_v3 = vld [vmem:[#allocation2 + $0x178] ss:$20 sps:$4 sm:$0xff]  }
  0x3c   :  { %649 = vmatpush1.bf16.msra.mxu1 %v2543_v25  ;;  %v2578_v61 = vld [vmem:[#allocation2 + $0x214] ss:$20 sps:$4 sm:$0xff]   ;;  %v2580_v63 = vld [vmem:[#allocation2 + $0x210] ss:$20 sps:$4 sm:$0xff]   ;;  %v2583_v4 = vld [vmem:[#allocation2 + $0x238] ss:$20 sps:$4 sm:$0xff]  }
  0x3d   :  { %610 = vmatpush1.bf16.msra.mxu0 %v2508_v16  ;;  %650 = vmatprep.subr.bf16.mxu1 %v2545_v26  ;;  %v2581_v1 = vld [vmem:[#allocation2 + $0x23c] ss:$20 sps:$4 sm:$0xff]   ;;  %v2584_v5 = vld [vmem:[#allocation2 + $0x264] ss:$20 sps:$4 sm:$0xff]   ;;  %v2591_v7 = vld [vmem:[#allocation2 + $0x1a0] ss:$20 sps:$4 sm:$0xff]  }
  0x3e   :  { %611 = vmatprep.subr.bf16.mxu0 %v2509_v19  ;;  %v2588_v2 = vld [vmem:[#allocation2 + $0x10] ss:$20 sps:$4 sm:$0xff]   ;;  %v2590_v6 = vld [vmem:[#allocation2 + $0x38] ss:$20 sps:$4 sm:$0xff]   ;;  %v2586_v8 = vld [vmem:[#allocation2 + $0x260] ss:$20 sps:$4 sm:$0xff]  }
  0x3f   :  { %v2592_v9 = vld [vmem:[#allocation2 + $0x60] ss:$20 sps:$4 sm:$0xff]   ;;  %v2605_v10 = vld [vmem:[#allocation5 + $0x4] ss:$12 sps:$4 sm:$0xff]   ;;  %v2593_v11 = vld [vmem:[#allocation2 + $0x1c8] ss:$20 sps:$4 sm:$0xff]  }
  0x40   :  { %651 = vmatpush1.bf16.msra.mxu1 %v2549_v28  ;;  %v2594_v12 = vld [vmem:[#allocation2 + $0x88] ss:$20 sps:$4 sm:$0xff]   ;;  %v2603_v13 = vld [vmem:[#allocation5] ss:$12 sps:$4 sm:$0xff]   ;;  %v2595_v15 = vld [vmem:[#allocation2 + $0x1f0] ss:$20 sps:$4 sm:$0xff]  }
  0x41   :  { %612 = vmatpush1.bf16.msra.mxu0 %v2511_v21  ;;  %652 = vmatprep.subr.bf16.mxu1 %v2551_v31  ;;  %v2608_v14 = vld [vmem:[#allocation5 + $0x1c] ss:$12 sps:$4 sm:$0xff]   ;;  %v2596_v16 = vld [vmem:[#allocation2 + $0xb0] ss:$20 sps:$4 sm:$0xff]   ;;  %v2611_v18 = vld [vmem:[#allocation5 + $0x34] ss:$12 sps:$4 sm:$0xff]  }
  0x42   :  { %613 = vmatprep.subr.bf16.mxu0 %v2512_v23  ;;  %v2606_v17 = vld [vmem:[#allocation5 + $0x18] ss:$12 sps:$4 sm:$0xff]   ;;  %v2609_v21 = vld [vmem:[#allocation5 + $0x30] ss:$12 sps:$4 sm:$0xff]   ;;  %v2599_v23 = vld [vmem:[#allocation2 + $0x240] ss:$20 sps:$4 sm:$0xff]  }
  0x43   :  { %v2597_v19 = vld [vmem:[#allocation2 + $0x218] ss:$20 sps:$4 sm:$0xff]   ;;  %v2612_v25 = vld [vmem:[#allocation5 + $0x48] ss:$12 sps:$4 sm:$0xff]  }
  0x44   :  { %653 = vmatpush1.bf16.msra.mxu1 %v2555_v35  ;;  %v2598_v20 = vld [vmem:[#allocation2 + $0xd8] ss:$20 sps:$4 sm:$0xff]   ;;  %v2601_v26 = vld [vmem:[#allocation2 + $0x268] ss:$20 sps:$4 sm:$0xff]  }
  0x45   :  { %614 = vmatpush1.bf16.msra.mxu0 %v2514_v24  ;;  %654 = vmatprep.subr.bf16.mxu1 %v2557_v36  ;;  %v2614_v22 = vld [vmem:[#allocation5 + $0x4c] ss:$12 sps:$4 sm:$0xff]   ;;  %v2600_v24 = vld [vmem:[#allocation2 + $0x100] ss:$20 sps:$4 sm:$0xff]   ;;  %v2621_v36 = vld [vmem:[#allocation5 + $0x90] ss:$12 sps:$4 sm:$0xff]  }
  0x46   :  { %615 = vmatprep.subr.bf16.mxu0 %v2517_v27  ;;  %v2617_v27 = vld [vmem:[#allocation5 + $0x64] ss:$12 sps:$4 sm:$0xff]   ;;  %v2615_v28 = vld [vmem:[#allocation5 + $0x60] ss:$12 sps:$4 sm:$0xff]   ;;  %v2630_v31 = vld [vmem:[#allocation5 + $0xc8] ss:$12 sps:$4 sm:$0xff]  }
  0x47   :  { %v2618_v32 = vld [vmem:[#allocation5 + $0x78] ss:$12 sps:$4 sm:$0xff]   ;;  %v2635_v35 = vld [vmem:[#allocation5 + $0xe0] ss:$12 sps:$4 sm:$0xff]  }
  0x48   :  { %655 = vmatpush1.bf16.msra.mxu1 %v2561_v39  ;;  %v2640_v39 = vld [vmem:[#allocation5 + $0xf8] ss:$12 sps:$4 sm:$0xff]  }
  0x49   :  { %616 = vmatpush1.bf16.msra.mxu0 %v2520_v29  ;;  %656 = vmatprep.subr.bf16.mxu1 %v2563_v40  ;;  %v2602_v29 = vld [vmem:[#allocation2 + $0x128] ss:$20 sps:$4 sm:$0xff]   ;;  %v2652_v59 = vld [vmem:[#allocation5 + $0x138] ss:$12 sps:$4 sm:$0xff]  }
  0x4a   :  { %617 = vmatprep.subr.bf16.mxu0 %v2523_v30  ;;  %v2620_v30 = vld [vmem:[#allocation5 + $0x7c] ss:$12 sps:$4 sm:$0xff]  }
  0x4b   :  { %v2624_v40 = vld [vmem:[#allocation5 + $0xa8] ss:$12 sps:$4 sm:$0xff]  }
  0x4c   :  { %657 = vmatpush1.bf16.msra.mxu1 %v2565_v43  ;;  %v2645_v43 = vld [vmem:[#allocation5 + $0x110] ss:$12 sps:$4 sm:$0xff]  }
  0x4d   :  { %618 = vmatpush1.bf16.msra.mxu0 %v2526_v33  ;;  %658 = vmatprep.subr.bf16.mxu1 %v2566_v44  ;;  %v2623_v33 = vld [vmem:[#allocation5 + $0x94] ss:$12 sps:$4 sm:$0xff]  }
  0x4e   :  { %619 = vmatprep.subr.bf16.mxu0 %v2529_v37  ;;  %v2626_v37 = vld [vmem:[#allocation5 + $0xac] ss:$12 sps:$4 sm:$0xff]  }
  0x4f   :  { %v2627_v44 = vld [vmem:[#allocation5 + $0xc0] ss:$12 sps:$4 sm:$0xff]  }
  0x50   :  { %659 = vmatpush1.bf16.msra.mxu1 %v2568_v47  ;;  %v2650_v47 = vld [vmem:[#allocation5 + $0x128] ss:$12 sps:$4 sm:$0xff]  }
  0x51   :  { %620 = vmatpush1.bf16.msra.mxu0 %v2532_v38  ;;  %660 = vmatprep.subr.bf16.mxu1 %v2569_v48  ;;  %v2636_v38 = vld [vmem:[#allocation5 + $0x20] ss:$12 sps:$4 sm:$0xff]   ;;  %v2632_v48 = vld [vmem:[#allocation5 + $0xd8] ss:$12 sps:$4 sm:$0xff]  }
  0x52   :  { %621 = vmatprep.subr.bf16.mxu0 %v2535_v41  ;;  %v2629_v41 = vld [vmem:[#allocation5 + $0xc4] ss:$12 sps:$4 sm:$0xff]  }
  0x54   :  { %661 = vmatpush1.bf16.msra.mxu1 %v2571_v51  ;;  %v2655_v51 = vld [vmem:[#allocation5 + $0x140] ss:$12 sps:$4 sm:$0xff]  }
  0x55   :  { %622 = vmatpush1.bf16.msra.mxu0 %v2538_v42  ;;  %662 = vmatprep.subr.bf16.mxu1 %v2572_v52  ;;  %v2641_v42 = vld [vmem:[#allocation5 + $0x38] ss:$12 sps:$4 sm:$0xff]   ;;  %v2637_v52 = vld [vmem:[#allocation5 + $0xf0] ss:$12 sps:$4 sm:$0xff]  }
  0x56   :  { %623 = vmatprep.subr.bf16.mxu0 %v2541_v45  ;;  %v2634_v45 = vld [vmem:[#allocation5 + $0xdc] ss:$12 sps:$4 sm:$0xff]  }
  0x58   :  { %663 = vmatpush1.bf16.msra.mxu1 %v2574_v55  ;;  %v2642_v55 = vld [vmem:[#allocation5 + $0x108] ss:$12 sps:$4 sm:$0xff]  }
  0x59   :  { %624 = vmatpush1.bf16.msra.mxu0 %v2544_v46  ;;  %664 = vmatprep.subr.bf16.mxu1 %v2575_v56  ;;  %v2646_v46 = vld [vmem:[#allocation5 + $0x50] ss:$12 sps:$4 sm:$0xff]  }
  0x5a   :  { %625 = vmatprep.subr.bf16.mxu0 %v2547_v49  ;;  %v2639_v49 = vld [vmem:[#allocation5 + $0xf4] ss:$12 sps:$4 sm:$0xff]   ;;  %v2649_v56 = vld [vmem:[#allocation5 + $0x124] ss:$12 sps:$4 sm:$0xff]  }
  0x5c   :  { %665 = vmatpush1.bf16.msra.mxu1 %v2577_v60  ;;  %v2659_v60 = vld [vmem:[#allocation5 + $0x154] ss:$12 sps:$4 sm:$0xff]  }
  0x5d   :  { %626 = vmatpush1.bf16.msra.mxu0 %v2550_v50  ;;  %666 = vmatprep.subr.bf16.mxu1 %v2578_v61  ;;  %v2651_v50 = vld [vmem:[#allocation5 + $0x68] ss:$12 sps:$4 sm:$0xff]   ;;  %v2660_v61 = vld [vmem:[#allocation5 + $0x158] ss:$12 sps:$4 sm:$0xff]  }
  0x5e   :  { %627 = vmatprep.subr.bf16.mxu0 %v2553_v53  ;;  %v2644_v53 = vld [vmem:[#allocation5 + $0x10c] ss:$12 sps:$4 sm:$0xff]  }
  0x60   :  { %667 = vmatpush1.bf16.msra.mxu1 %v2580_v63  ;;  %v2661_v63 = vld [vmem:[#allocation5 + $0x98] ss:$12 sps:$4 sm:$0xff]  }
  0x61   :  { %628 = vmatpush1.bf16.msra.mxu0 %v2556_v54  ;;  %668 = vmatprep.subr.bf16.mxu1 %v2581_v1  ;;  %v2656_v54 = vld [vmem:[#allocation5 + $0x80] ss:$12 sps:$4 sm:$0xff]   ;;  %v2665_v1 = vld [vmem:[#allocation5 + $0x170] ss:$12 sps:$4 sm:$0xff]  }
  0x62   :  { %629 = vmatprep.subr.bf16.mxu0 %v2559_v57  ;;  %v2647_v57 = vld [vmem:[#allocation5 + $0x120] ss:$12 sps:$4 sm:$0xff]  }
  0x64   :  { %669 = vmatpush1.bf16.msra.mxu1 %v2583_v4  ;;  %v2669_v4 = vld [vmem:[#allocation5 + $0x184] ss:$12 sps:$4 sm:$0xff]  }
  0x65   :  { %630 = vmatpush1.bf16.msra.mxu0 %v2562_v58  ;;  %670 = vmatprep.subr.bf16.mxu1 %v2584_v5  ;;  %v2654_v58 = vld [vmem:[#allocation5 + $0x13c] ss:$12 sps:$4 sm:$0xff]  }
  0x66   :  { %2325 = vmatprep.subr.bf16.mxu0 %v2587_v62  ;;  %v2657_v62 = vld [vmem:[#allocation5 + $0x150] ss:$12 sps:$4 sm:$0xff]   ;;  %v2670_v5 = vld [vmem:[#allocation5 + $0x248] ss:$12 sps:$4 sm:$0xff]  }
  0x68   :  { %632 = vmatmul.mubr.bf16.vlgmr.msra.gmra.mrb[0].mxu0 %v2947_v0  ;;  %671 = vmatpush1.bf16.msra.mxu1 %v2586_v8 }
  0x69   :  { %2326 = vmatpush3.bf16.msra.mxu0 %v2588_v2  ;;  %713 = vmatprep.mubr.bf16.mxu0 %v2940_v34  ;;  %v2631_v34 = vld [vmem:[#allocation5 + $0x8] ss:$12 sps:$4 sm:$0xff]  }
  0x6a   :  { %2327 = vmatprep.subr.bf16.mxu0 %v2589_v3  ;;  %1548 = vmatprep.subr.bf16.mxu1 %v2605_v10  ;;  %v2662_v2 = vld [vmem:[#allocation5 + $0x168] ss:$12 sps:$4 sm:$0xff]   ;;  %v2666_v3 = vld [vmem:[#allocation5 + $0xb0] ss:$12 sps:$4 sm:$0xff]  }
  0x6b   :  { %673 = vmatmul.mubr.bf16.vlgmr.msra.gmra.mrb[0].mxu1 %v2947_v0 }
  0x6c   :  { %1549 = vmatpush1.bf16.msra.mxu1 %v2603_v13 }
  0x6d   :  { %2328 = vmatpush3.bf16.msra.mxu0 %v2590_v6  ;;  %1550 = vmatprep.subr.bf16.mxu1 %v2608_v14  ;;  %v158_v6 = vlaneseq }
  0x6e   :  { %2329 = vmatprep.subr.bf16.mxu0 %v2591_v7 }
  0x6f   :  { %v2953_v7 = vshrl.u32 %v158_v6, 7  ;;  %v2709_v6 = vld [vmem:[#allocation5 + $0x244] ss:$12 sps:$4 sm:$0xff]  }
  0x70   :  { %1551 = vmatpush1.bf16.msra.mxu1 %v2606_v17 }
  0x71   :  { %2330 = vmatpush3.bf16.msra.mxu0 %v2592_v9  ;;  %1552 = vmatprep.subr.bf16.mxu1 %v2611_v18  ;;  %v160_v8 = vsub.s32 0, %v2953_v7  ;;  %v2959_v9 = vld [vmem:[%s3098_s2] sm:$0x1f]  ;;  %v164_v10 = vsub.s32 1, %v2953_v7 }
  0x72   :  { %2331 = vmatprep.subr.bf16.mxu0 %v2593_v11 }
  0x73   :  { %v161_v11 = vrot.slane %v2959_v9, %v160_v8 }
  0x74   :  { %1553 = vmatpush1.bf16.msra.mxu1 %v2609_v21  ;;  %v172_v21 = vsub.s32 3, %v2953_v7 }
  0x75   :  { %2332 = vmatpush3.bf16.msra.mxu0 %v2594_v12  ;;  %1554 = vmatprep.subr.bf16.mxu1 %v2614_v22  ;;  %v165_v12 = vrot.slane %v2959_v9, %v164_v10 }
  0x76   :  { %2333 = vmatprep.subr.bf16.mxu0 %v2595_v15 }
  0x78   :  { %1555 = vmatpush1.bf16.msra.mxu1 %v2612_v25 }
  0x79   :  { %2334 = vmatpush3.bf16.msra.mxu0 %v2596_v16  ;;  %1556 = vmatprep.subr.bf16.mxu1 %v2617_v27  ;;  %v2675_v27 = vld [vmem:[#allocation5 + $0x260] ss:$12 sps:$4 sm:$0xff]  }
  0x7a   :  { %2335 = vmatprep.subr.bf16.mxu0 %v2597_v19 }
  0x7c   :  { %1557 = vmatpush1.bf16.msra.mxu1 %v2615_v28  ;;  %v173_v28 = vrot.slane %v2959_v9, %v172_v21  ;;  %v2718_v21 = vld [vmem:[#allocation5 + $0x338] ss:$12 sps:$4 sm:$0xff]  }
  0x7d   :  { %2336 = vmatpush3.bf16.msra.mxu0 %v2598_v20  ;;  %1558 = vmatprep.subr.bf16.mxu1 %v2620_v30  ;;  %v2676_v30 = vld [vmem:[#allocation5 + $0x1a0] ss:$12 sps:$4 sm:$0xff]  }
  0x7e   :  { %2337 = vmatprep.subr.bf16.mxu0 %v2599_v23  ;;  %v2667_v23 = vld [vmem:[#allocation5 + $0x180] ss:$12 sps:$4 sm:$0xff]  }
  0x80   :  { %1559 = vmatpush1.bf16.msra.mxu1 %v2618_v32  ;;  %v2680_v32 = vld [vmem:[#allocation5 + $0x278] ss:$12 sps:$4 sm:$0xff]  }
  0x81   :  { %2338 = vmatpush3.bf16.msra.mxu0 %v2600_v24  ;;  %1560 = vmatprep.subr.bf16.mxu1 %v2623_v33  ;;  %v2671_v24 = vld [vmem:[#allocation5 + $0x188] ss:$12 sps:$4 sm:$0xff]  }
  0x82   :  { %2339 = vmatprep.subr.bf16.mxu0 %v2601_v26  ;;  %v2674_v26 = vld [vmem:[#allocation5 + $0x19c] ss:$12 sps:$4 sm:$0xff]  }
  0x84   :  { %1561 = vmatpush1.bf16.msra.mxu1 %v2621_v36 }
  0x85   :  { %2340 = vmatpush3.bf16.msra.mxu0 %v2602_v29  ;;  %1562 = vmatprep.subr.bf16.mxu1 %v2626_v37  ;;  %v2672_v29 = vld [vmem:[#allocation5 + $0x198] ss:$12 sps:$4 sm:$0xff]   ;;  %v2677_v37 = vld [vmem:[#allocation5 + $0x1b0] ss:$12 sps:$4 sm:$0xff]  }
  0x86   :  { %2347 = vmatprep.subr.bf16.mxu0 %v2630_v31  ;;  %v2679_v31 = vld [vmem:[#allocation5 + $0x1b4] ss:$12 sps:$4 sm:$0xff]  }
  0x88   :  { %714 = vmatmul.mubr.bf16.vlgmr.msra.gmra.mrb[4].mxu0 %v2947_v0  ;;  %1563 = vmatpush1.bf16.msra.mxu1 %v2624_v40  ;;  %v2664_v0 = vld [vmem:[#allocation5 + $0x16c] ss:$12 sps:$4 sm:$0xff]  }
  0x89   :  { %2348 = vmatpush3.bf16.msra.mxu0 %v2631_v34  ;;  %1564 = vmatprep.subr.bf16.mxu1 %v2629_v41  ;;  %v2684_v40 = vld [vmem:[#allocation5 + $0x1cc] ss:$12 sps:$4 sm:$0xff]   ;;  %v2685_v41 = vld [vmem:[#allocation5 + $0x290] ss:$12 sps:$4 sm:$0xff]  }
  0x8a   :  { %2349 = vmatprep.subr.bf16.mxu0 %v2635_v35 }
  0x8c   :  { %1565 = vmatpush1.bf16.msra.mxu1 %v2627_v44  ;;  %v2682_v44 = vld [vmem:[#allocation5 + $0x1c8] ss:$12 sps:$4 sm:$0xff]  }
  0x8d   :  { %2350 = vmatpush3.bf16.msra.mxu0 %v2636_v38  ;;  %1566 = vmatprep.subr.bf16.mxu1 %v2634_v45  ;;  %v2681_v38 = vld [vmem:[#allocation5 + $0x1b8] ss:$12 sps:$4 sm:$0xff]   ;;  %v2686_v45 = vld [vmem:[#allocation5 + $0x1d0] ss:$12 sps:$4 sm:$0xff]  }
  0x8e   :  { %2351 = vmatprep.subr.bf16.mxu0 %v2640_v39 }
  0x90   :  { %1567 = vmatpush1.bf16.msra.mxu1 %v2632_v48  ;;  %v168_v48 = vsub.s32 2, %v2953_v7 }
  0x91   :  { %2352 = vmatpush3.bf16.msra.mxu0 %v2641_v42  ;;  %1568 = vmatprep.subr.bf16.mxu1 %v2639_v49  ;;  %v2687_v49 = vld [vmem:[#allocation5 + $0x1e0] ss:$12 sps:$4 sm:$0xff]  }
  0x92   :  { %2353 = vmatprep.subr.bf16.mxu0 %v2645_v43 }
  0x94   :  { %1569 = vmatpush1.bf16.msra.mxu1 %v2637_v52  ;;  %v2695_v52 = vld [vmem:[#allocation5 + $0x2c0] ss:$12 sps:$4 sm:$0xff]  }
  0x95   :  { %2354 = vmatpush3.bf16.msra.mxu0 %v2646_v46  ;;  %1570 = vmatprep.subr.bf16.mxu1 %v2644_v53  ;;  %v2689_v46 = vld [vmem:[#allocation5 + $0x1e4] ss:$12 sps:$4 sm:$0xff]   ;;  %v169_v53 = vrot.slane %v2959_v9, %v168_v48 }
  0x96   :  { %2355 = vmatprep.subr.bf16.mxu0 %v2650_v47  ;;  %v2690_v47 = vld [vmem:[#allocation5 + $0x2a8] ss:$12 sps:$4 sm:$0xff]  }
  0x98   :  { %1571 = vmatpush1.bf16.msra.mxu1 %v2642_v55  ;;  %v2696_v55 = vld [vmem:[#allocation5 + $0x200] ss:$12 sps:$4 sm:$0xff]  }
  0x99   :  { %2356 = vmatpush3.bf16.msra.mxu0 %v2651_v50  ;;  %1572 = vmatprep.subr.bf16.mxu1 %v2649_v56  ;;  %v2691_v50 = vld [vmem:[#allocation5 + $0x1e8] ss:$12 sps:$4 sm:$0xff]  }
  0x9a   :  { %2357 = vmatprep.subr.bf16.mxu0 %v2655_v51  ;;  %v2694_v51 = vld [vmem:[#allocation5 + $0x1fc] ss:$12 sps:$4 sm:$0xff]   ;;  %v2699_v56 = vld [vmem:[#allocation5 + $0x214] ss:$12 sps:$4 sm:$0xff]  }
  0x9c   :  { %1573 = vmatpush1.bf16.msra.mxu1 %v2647_v57  ;;  %v2700_v57 = vld [vmem:[#allocation5 + $0x2d8] ss:$12 sps:$4 sm:$0xff]  }
  0x9d   :  { %2358 = vmatpush3.bf16.msra.mxu0 %v2656_v54  ;;  %1574 = vmatprep.subr.bf16.mxu1 %v2654_v58  ;;  %v2692_v54 = vld [vmem:[#allocation5 + $0x1f8] ss:$12 sps:$4 sm:$0xff]  }
  0x9e   :  { %2359 = vmatprep.subr.bf16.mxu0 %v2660_v61  ;;  %v2704_v61 = vld [vmem:[#allocation5 + $0x22c] ss:$12 sps:$4 sm:$0xff]  }
  0xa0   :  { %1575 = vmatpush1.bf16.msra.mxu1 %v2652_v59  ;;  %v2697_v59 = vld [vmem:[#allocation5 + $0x210] ss:$12 sps:$4 sm:$0xff]  }
  0xa1   :  { %1576 = vmatprep.subr.bf16.mxu1 %v2659_v60  ;;  %2360 = vmatpush3.bf16.msra.mxu0 %v2661_v63  ;;  %v2701_v60 = vld [vmem:[#allocation5 + $0x218] ss:$12 sps:$4 sm:$0xff]  }
  0xa2   :  { %2361 = vmatprep.subr.bf16.mxu0 %v2665_v1 }
  0xa4   :  { %1577 = vmatpush1.bf16.msra.mxu1 %v2657_v62  ;;  %v2705_v62 = vld [vmem:[#allocation5 + $0x2f0] ss:$12 sps:$4 sm:$0xff]  }
  0xa5   :  { %1578 = vmatprep.subr.bf16.mxu1 %v2664_v0  ;;  %2362 = vmatpush3.bf16.msra.mxu0 %v2666_v3  ;;  %v2706_v3 = vld [vmem:[#allocation5 + $0x230] ss:$12 sps:$4 sm:$0xff]  }
  0xa6   :  { %2369 = vmatprep.subr.bf16.mxu0 %v2670_v5 }
  0xa8   :  { %1579 = vmatpush1.bf16.msra.mxu1 %v2662_v2  ;;  %v2702_v2 = vld [vmem:[#allocation5 + $0x228] ss:$12 sps:$4 sm:$0xff]  }
  0xa9   :  { %1589 = vmatprep.subr.bf16.mxu1 %v2669_v4 }
 0x13b   :  { %v633_v13 = vpop.f32.mrb[0].mxu0 }
 0x13c   :  { %v634_v14 = vadd.f32 %v633_v13, %v161_v11  ;;  %v635_v15 = vpop.f32.mrb[1].mxu0  ;;  %v2707_v13 = vld [vmem:[#allocation5 + $0x240] ss:$12 sps:$4 sm:$0xff]  }
 0x13d   :  { %v636_v16 = vadd.f32 %v635_v15, %v165_v12  ;;  %v637_v17 = vpop.f32.mrb[2].mxu0  ;;  %v2869_v15 = vmov 0.0  }
 0x13e   :  { %v721_v18 = vmax.f32 %v634_v14, 0.0  ;;  %v638_v19 = vpop.f32.mrb[3].mxu0  ;;  %v674_v33 = vpop.f32.mrb[0].mxu1  ;;  %v2710_v14 = vld [vmem:[#allocation5 + $0x308] ss:$12 sps:$4 sm:$0xff]  }
 0x13f   :  { %v722_v20 = vmax.f32 %v636_v16, 0.0  ;;  %v676_v34 = vpop.f32.mrb[1].mxu1  ;;  %v675_v58 = vadd.f32 %v674_v33, %v169_v53  ;;  %v2713_v16 = vld [vmem:[#allocation5 + $0x25c] ss:$12 sps:$4 sm:$0xff]   ;;  %v2711_v17 = vld [vmem:[#allocation5 + $0x258] ss:$12 sps:$4 sm:$0xff]  }
 0x140   :  { %v726_v25 = vpack.c.bf16 %v721_v18, %v721_v18  ;;  %v677_v35 = vadd.f32 %v676_v34, %v173_v28  ;;  %v678_v36 = vpop.f32.mrb[2].mxu1  ;;  %v2714_v18 = vld [vmem:[#allocation5 + $0x320] ss:$12 sps:$4 sm:$0xff]   ;;  %v2726_v28 = vld [vmem:[#allocation5 + $0x368] ss:$12 sps:$4 sm:$0xff]  }
 0x141   :  { %v727_v22 = vpack.c.bf16 %v722_v20, %v722_v20  ;;  %v679_v39 = vpop.f32.mrb[3].mxu1  ;;  %v723_v0 = vmax.f32 %v675_v58, 0.0  ;;  %v2717_v19 = vld [vmem:[#allocation5 + $0x274] ss:$12 sps:$4 sm:$0xff]   ;;  %v2715_v20 = vld [vmem:[#allocation5 + $0x270] ss:$12 sps:$4 sm:$0xff]  }
 0x142   :  { %v724_v42 = vmax.f32 %v677_v35, 0.0  ;;  %v2733_v33 = vld [vmem:[#allocation5 + $0x2d4] ss:$12 sps:$4 sm:$0xff]   ;;  %v2731_v35 = vld [vmem:[#allocation5 + $0x2d0] ss:$12 sps:$4 sm:$0xff]  }
 0x143   :  { %1580 = vmatprep.mubr.bf16.mxu1 %v727_v22  ;;  %1703 = vmatprep.mubr.bf16.mxu0 %v727_v22  ;;  %v2974_v12 = vpack.c.bf16 %v723_v0, %v723_v0  ;;  %v2721_v22 = vld [vmem:[#allocation5 + $0x28c] ss:$12 sps:$4 sm:$0xff]   ;;  %v2738_v39 = vld [vmem:[#allocation5 + $0x3b0] ss:$12 sps:$4 sm:$0xff]   ;;  %v2760_v58 = vld [vmem:[#allocation5 + $0x3a8] ss:$12 sps:$4 sm:$0xff]  }
 0x144   :  { %1581 = vmatmul.mubr.bf16.vlgmr.msra.gmra.mrb[4].mxu1 %v726_v25  ;;  %1704 = vmatmul.mubr.bf16.vlgmr.msra.gmra.mrb[8].mxu0 %v726_v25  ;;  %v729_v43 = vpack.c.bf16 %v724_v42, %v724_v42  ;;  %v2725_v25 = vld [vmem:[#allocation5 + $0x2a4] ss:$12 sps:$4 sm:$0xff]   ;;  %v2739_v42 = vld [vmem:[#allocation5 + $0x300] ss:$12 sps:$4 sm:$0xff]   ;;  %v2756_v53 = vld [vmem:[#allocation5 + $0x37c] ss:$12 sps:$4 sm:$0xff]  }
 0x145   :  { %1590 = vmatpush1.bf16.msra.mxu1 %v2667_v23  ;;  %2370 = vmatpush3.bf16.msra.mxu0 %v2671_v24  ;;  %v2719_v23 = vld [vmem:[#allocation5 + $0x288] ss:$12 sps:$4 sm:$0xff]   ;;  %v2722_v24 = vld [vmem:[#allocation5 + $0x350] ss:$12 sps:$4 sm:$0xff]   ;;  %v2734_v36 = vld [vmem:[#allocation5 + $0x398] ss:$12 sps:$4 sm:$0xff]  }
 0x146   :  { %1591 = vmatprep.subr.bf16.mxu1 %v2674_v26  ;;  %2371 = vmatprep.subr.bf16.mxu0 %v2675_v27  ;;  %v176_v26 = vsub.s32 4, %v2953_v7  ;;  %v2723_v27 = vld [vmem:[#allocation5 + $0x2a0] ss:$12 sps:$4 sm:$0xff]   ;;  %v2768_v0 = vld [vmem:[%s3101_s5 + $0x10] sm:$0xff]  }
 0x147   :  { %1743 = vmatprep.mubr.bf16.mxu0 %v729_v43  ;;  %1621 = vmatprep.mubr.bf16.mxu1 %v729_v43  ;;  %v2744_v43 = vld [vmem:[#allocation5 + $0x31c] ss:$12 sps:$4 sm:$0xff]  }
 0x148   :  { %v2780_v7 = vld [vmem:[%s3101_s5 + $0x88] sm:$0xff]  }
 0x149   :  { %1592 = vmatpush1.bf16.msra.mxu1 %v2672_v29  ;;  %2372 = vmatpush3.bf16.msra.mxu0 %v2676_v30  ;;  %v2729_v29 = vld [vmem:[#allocation5 + $0x2bc] ss:$12 sps:$4 sm:$0xff]   ;;  %v177_v30 = vrot.slane %v2959_v9, %v176_v26 }
 0x14a   :  { %1593 = vmatprep.subr.bf16.mxu1 %v2679_v31  ;;  %2373 = vmatprep.subr.bf16.mxu0 %v2680_v32  ;;  %v2727_v31 = vld [vmem:[#allocation5 + $0x2b8] ss:$12 sps:$4 sm:$0xff]   ;;  %v2730_v32 = vld [vmem:[#allocation5 + $0x380] ss:$12 sps:$4 sm:$0xff]   ;;  %v2735_v9 = vld [vmem:[#allocation5 + $0x2e8] ss:$12 sps:$4 sm:$0xff]  }
 0x14d   :  { %1594 = vmatpush1.bf16.msra.mxu1 %v2677_v37  ;;  %2374 = vmatpush3.bf16.msra.mxu0 %v2681_v38  ;;  %v2737_v37 = vld [vmem:[#allocation5 + $0x2ec] ss:$12 sps:$4 sm:$0xff]  }
 0x14e   :  { %1595 = vmatprep.subr.bf16.mxu1 %v2684_v40  ;;  %2375 = vmatprep.subr.bf16.mxu0 %v2685_v41  ;;  %v2741_v40 = vld [vmem:[#allocation5 + $0x304] ss:$12 sps:$4 sm:$0xff]  }
 0x151   :  { %1596 = vmatpush1.bf16.msra.mxu1 %v2682_v44  ;;  %2376 = vmatpush3.bf16.msra.mxu0 %v2686_v45  ;;  %v2742_v44 = vld [vmem:[#allocation5 + $0x318] ss:$12 sps:$4 sm:$0xff]   ;;  %v2871_v45 = vmov 0  }
 0x152   :  { %1597 = vmatprep.subr.bf16.mxu1 %v2689_v46  ;;  %2377 = vmatprep.subr.bf16.mxu0 %v2690_v47  ;;  %v2747_v46 = vld [vmem:[#allocation5 + $0x334] ss:$12 sps:$4 sm:$0xff]   ;;  %v2745_v47 = vld [vmem:[#allocation5 + $0x330] ss:$12 sps:$4 sm:$0xff]  }
 0x155   :  { %1598 = vmatpush1.bf16.msra.mxu1 %v2687_v49  ;;  %2378 = vmatpush3.bf16.msra.mxu0 %v2691_v50  ;;  %v2750_v49 = vld [vmem:[#allocation5 + $0x34c] ss:$12 sps:$4 sm:$0xff]   ;;  %v2748_v50 = vld [vmem:[#allocation5 + $0x348] ss:$12 sps:$4 sm:$0xff]  }
 0x156   :  { %1599 = vmatprep.subr.bf16.mxu1 %v2694_v51  ;;  %2379 = vmatprep.subr.bf16.mxu0 %v2695_v52  ;;  %v2753_v51 = vld [vmem:[#allocation5 + $0x364] ss:$12 sps:$4 sm:$0xff]   ;;  %v2751_v52 = vld [vmem:[#allocation5 + $0x360] ss:$12 sps:$4 sm:$0xff]  }
 0x159   :  { %1600 = vmatpush1.bf16.msra.mxu1 %v2692_v54  ;;  %2380 = vmatpush3.bf16.msra.mxu0 %v2696_v55  ;;  %v2754_v54 = vld [vmem:[#allocation5 + $0x378] ss:$12 sps:$4 sm:$0xff]   ;;  %v2759_v55 = vld [vmem:[#allocation5 + $0x394] ss:$12 sps:$4 sm:$0xff]  }
 0x15a   :  { %1601 = vmatprep.subr.bf16.mxu1 %v2699_v56  ;;  %2381 = vmatprep.subr.bf16.mxu0 %v2700_v57  ;;  %v2757_v56 = vld [vmem:[#allocation5 + $0x390] ss:$12 sps:$4 sm:$0xff]   ;;  %v2762_v57 = vld [vmem:[#allocation5 + $0x3ac] ss:$12 sps:$4 sm:$0xff]  }
 0x15b   :  { %v2341_v63 = vpop.f32.mrb[4].mxu0 }
 0x15c   :  { %v2342_v1 = vpop.f32.mrb[5].mxu0 }
 0x15d   :  { %1602 = vmatpush1.bf16.msra.mxu1 %v2697_v59  ;;  %2382 = vmatpush3.bf16.msra.mxu0 %v2701_v60  ;;  %v2343_v4 = vadd.f32 %v2342_v1, %v2341_v63  ;;  %v2344_v5 = vpop.f32.mrb[6].mxu0  ;;  %v2763_v59 = vld [vmem:[%s3101_s5 + $0x40] sm:$0xff]   ;;  %v2767_v63 = vld [vmem:[%s3101_s5 + $0x50] sm:$0xff]   ;;  %v2769_v1 = vld [vmem:[%s3101_s5 + $0x58] sm:$0xff]  }
 0x15e   :  { %1603 = vmatprep.subr.bf16.mxu1 %v2704_v61  ;;  %2383 = vmatprep.subr.bf16.mxu0 %v2705_v62  ;;  %v2345_v11 = vpop.f32.mrb[7].mxu0  ;;  %v2764_v60 = vld [vmem:[%s3101_s5] sm:$0xff]   ;;  %v2765_v61 = vld [vmem:[%s3101_s5 + $0x48] sm:$0xff]  }
 0x15f   :  { %v716_v34 = vadd.f32 %v2343_v4, %v177_v30  ;;  %v2766_v62 = vld [vmem:[%s3101_s5 + $0x8] sm:$0xff]   ;;  %v2772_v4 = vld [vmem:[%s3101_s5 + $0x20] sm:$0xff]   ;;  %v2775_v11 = vld [vmem:[%s3101_s5 + $0x70] sm:$0xff]  }
 0x160   :  { %v2773_v5 = vld [vmem:[%s3101_s5 + $0x68] sm:$0xff]  }
 0x161   :  { %1604 = vmatpush1.bf16.msra.mxu1 %v2702_v2  ;;  %2384 = vmatpush3.bf16.msra.mxu0 %v2706_v3  ;;  %v725_v38 = vmax.f32 %v716_v34, 0.0  ;;  %v2770_v2 = vld [vmem:[%s3101_s5 + $0x18] sm:$0xff]   ;;  %v2771_v3 = vld [vmem:[%s3101_s5 + $0x60] sm:$0xff]  }
 0x162   :  { %1605 = vmatprep.subr.bf16.mxu1 %v2709_v6  ;;  %2431 = vmatprep.subr.bf16.mxu0 %v2869_v15  ;;  %v2774_v6 = vld [vmem:[%s3101_s5 + $0x28] sm:$0xff]  }
 0x163   :  { %v730_v41 = vpack.c.bf16 %v725_v38, %v725_v38 }
 0x164   :  { %1744 = vmatmul.mubr.bf16.vlgmr.msra.gmra.mrb[12].mxu0 %v2974_v12 }
 0x165   :  { %1606 = vmatpush1.bf16.msra.mxu1 %v2707_v13  ;;  %2432 = vmatpush3.bf16.msra.mxu0 %v2710_v14  ;;  %v2777_v13 = vld [vmem:[%s3101_s5 + $0x78] sm:$0xff]  }
 0x166   :  { %1607 = vmatprep.subr.bf16.mxu1 %v2713_v16  ;;  %2433 = vmatprep.subr.bf16.mxu0 %v2869_v15  ;;  %v2778_v14 = vld [vmem:[%s3101_s5 + $0x38] sm:$0xff]  }
 0x167   :  { %2447 = vmatprep.mubr.msk.bf16.mxu0 %vm2870_vm0, %v2869_v15 }
 0x169   :  { %1608 = vmatpush1.bf16.msra.mxu1 %v2711_v17  ;;  %2434 = vmatpush3.bf16.msra.mxu0 %v2714_v18 }
 0x16a   :  { %1609 = vmatprep.subr.bf16.mxu1 %v2717_v19  ;;  %2435 = vmatprep.subr.bf16.mxu0 %v2869_v15 }
 0x16d   :  { %1610 = vmatpush1.bf16.msra.mxu1 %v2715_v20  ;;  %2436 = vmatpush3.bf16.msra.mxu0 %v2718_v21  ;;  %v891_v21 = vld [vmem:[%s3100_s4] sm:$0x7] }
 0x16e   :  { %1611 = vmatprep.subr.bf16.mxu1 %v2721_v22  ;;  %2437 = vmatprep.subr.bf16.mxu0 %v2869_v15  ;;  %v904_v22 = vrot.slane %v891_v21, %v168_v48 }
 0x171   :  { %1612 = vmatpush1.bf16.msra.mxu1 %v2719_v23  ;;  %2438 = vmatpush3.bf16.msra.mxu0 %v2722_v24 }
 0x172   :  { %1613 = vmatprep.subr.bf16.mxu1 %v2725_v25  ;;  %2439 = vmatprep.subr.bf16.mxu0 %v2869_v15 }
 0x175   :  { %1614 = vmatpush1.bf16.msra.mxu1 %v2723_v27  ;;  %2440 = vmatpush3.bf16.msra.mxu0 %v2726_v28 }
 0x176   :  { %1615 = vmatprep.subr.bf16.mxu1 %v2729_v29  ;;  %2441 = vmatprep.subr.bf16.mxu0 %v2869_v15 }
 0x179   :  { %1616 = vmatpush1.bf16.msra.mxu1 %v2727_v31  ;;  %2442 = vmatpush3.bf16.msra.mxu0 %v2730_v32 }
 0x17a   :  { %1617 = vmatprep.subr.bf16.mxu1 %v2733_v33  ;;  %2443 = vmatprep.subr.bf16.mxu0 %v2869_v15 }
 0x17d   :  { %1618 = vmatpush1.bf16.msra.mxu1 %v2731_v35  ;;  %2444 = vmatpush3.bf16.msra.mxu0 %v2734_v36  ;;  %v896_v35 = vrot.slane %v891_v21, %v160_v8  ;;  %v900_v36 = vrot.slane %v891_v21, %v164_v10  ;;  %v2781_v8 = vld [vmem:[%s3101_s5 + $0x90] sm:$0xff]   ;;  %v2782_v10 = vld [vmem:[%s3101_s5 + $0x98] sm:$0xff]  }
 0x17e   :  { %1619 = vmatprep.subr.bf16.mxu1 %v2737_v37  ;;  %2445 = vmatprep.subr.bf16.mxu0 %v2869_v15 }
 0x181   :  { %1620 = vmatpush1.bf16.msra.mxu1 %v2735_v9  ;;  %2446 = vmatpush3.bf16.msra.mxu0 %v2738_v39 }
 0x182   :  { %1630 = vmatprep.subr.bf16.mxu1 %v2741_v40  ;;  %2400 = vmatprep.subr.bf16.mxu0 %v2763_v59 }
 0x184   :  { %1622 = vmatmul.mubr.bf16.vlgmr.msra.gmra.mrb[4].mxu1 %v2974_v12  ;;  %2448 = vmatmul.mubr.bf16.vlgmr.msra.gmra.mrb[16].mxu0 %v730_v41  ;;  %v2776_v12 = vld [vmem:[%s3101_s5 + $0x30] sm:$0xff]  }
 0x185   :  { %1631 = vmatpush1.bf16.msra.mxu1 %v2739_v42  ;;  %1662 = vmatprep.mubr.bf16.mxu1 %v2871_v45 }
 0x186   :  { %1632 = vmatprep.subr.bf16.mxu1 %v2744_v43  ;;  %2401 = vmatpush3.bf16.msra.mxu0 %v2764_v60 }
 0x187   :  { %2402 = vmatprep.subr.bf16.mxu0 %v2765_v61 }
 0x189   :  { %1633 = vmatpush1.bf16.msra.mxu1 %v2742_v44  ;;  %v2779_v44 = vld [vmem:[%s3101_s5 + $0x80] sm:$0xff]  }
 0x18a   :  { %1634 = vmatprep.subr.bf16.mxu1 %v2747_v46  ;;  %2403 = vmatpush3.bf16.msra.mxu0 %v2766_v62  ;;  %v2783_v46 = vld [vmem:[%s3101_s5 + $0xa0] sm:$0xff]  }
 0x18b   :  { %2404 = vmatprep.subr.bf16.mxu0 %v2767_v63 }
 0x18d   :  { %1635 = vmatpush1.bf16.msra.mxu1 %v2745_v47  ;;  %v2784_v47 = vld [vmem:[%s3101_s5 + $0xa8] sm:$0xff]  }
 0x18e   :  { %1636 = vmatprep.subr.bf16.mxu1 %v2750_v49  ;;  %2405 = vmatpush3.bf16.msra.mxu0 %v2768_v0  ;;  %v2785_v49 = vld [vmem:[%s3101_s5 + $0xb0] sm:$0xff]  }
 0x18f   :  { %2406 = vmatprep.subr.bf16.mxu0 %v2769_v1 }
 0x191   :  { %1637 = vmatpush1.bf16.msra.mxu1 %v2748_v50  ;;  %v2786_v50 = vld [vmem:[%s3101_s5 + $0xb8] sm:$0xff]   ;;  %s2872_s5 = smov [#allocation7]  }
 0x192   :  { %1638 = vmatprep.subr.bf16.mxu1 %v2753_v51  ;;  %2407 = vmatpush3.bf16.msra.mxu0 %v2770_v2  ;;  %s2090_s30 = sshll.u32 %s2872_s5, 4  ;;  %s2091_s30 = int_to_ptr.vmem [resolvable:$true] %s2090_s30 }
 0x193   :  { %2408 = vmatprep.subr.bf16.mxu0 %v2771_v3  ;;  %s2835_s0 = scalar_lea.vmem %s2091_s30, 128  ;;  %p2840_p3 = scmp.lt.s32.totalorder %s2091_s30, %s2091_s30 }
 0x194   :  { %p2836_p2 = scmp.ne.s32.totalorder %s2091_s30, %s2835_s0  ;;  %p2841_p4 = scmp.lt.s32.totalorder %s2835_s0, %s2835_s0 }
 0x195   :  { %1639 = vmatpush1.bf16.msra.mxu1 %v2751_v52 }
 0x196   :  { %1640 = vmatprep.subr.bf16.mxu1 %v2756_v53  ;;  %2409 = vmatpush3.bf16.msra.mxu0 %v2772_v4  ;;  %p2842_p5 = por %p2841_p4, %p2840_p3 }
 0x197   :  { %2410 = vmatprep.subr.bf16.mxu0 %v2773_v5 }
 0x198   :  { %p2843_p6 = pnand %p2842_p5, %p2836_p2 }
 0x199   :  { %1641 = vmatpush1.bf16.msra.mxu1 %v2754_v54 }
 0x19a   :  { %1642 = vmatprep.subr.bf16.mxu1 %v2759_v55  ;;  %2411 = vmatpush3.bf16.msra.mxu0 %v2774_v6 }
 0x19b   :  { %2412 = vmatprep.subr.bf16.mxu0 %v2775_v11 }
 0x19d   :  { %1643 = vmatpush1.bf16.msra.mxu1 %v2757_v56 }
 0x19e   :  { %1644 = vmatprep.subr.bf16.mxu1 %v2762_v57  ;;  %2413 = vmatpush3.bf16.msra.mxu0 %v2776_v12 }
 0x19f   :  { %2414 = vmatprep.subr.bf16.mxu0 %v2777_v13 }
 0x1a1   :  { %1645 = vmatpush1.bf16.msra.mxu1 %v2760_v58  ;;  %v2300_v58 = vld [vmem:[%s3102_s6] ss:$0 sm:$0xff] }
 0x1a2   :  { %2415 = vmatpush3.bf16.msra.mxu0 %v2778_v14 }
 0x1a3   :  { %2451 = vmatprep.subr.bf16.mxu0 %v2869_v15 }
 0x1a4   :  { %1663 = vmatmul.mubr.bf16.vlgmr.msra.gmra.mrb[4].mxu1 %v730_v41 }
 0x217   :  { %v2363_v16 = vpop.f32.mrb[8].mxu0 }
 0x218   :  { %v2364_v17 = vpop.f32.mrb[9].mxu0 }
 0x219   :  { %v2365_v18 = vadd.f32 %v2364_v17, %v2363_v16  ;;  %v2366_v19 = vpop.f32.mrb[10].mxu0 }
 0x21a   :  { %v2367_v20 = vpop.f32.mrb[11].mxu0 }
 0x21b   :  { %v1706_v25 = vadd.f32 %v2365_v18, %v904_v22 }
 0x237   :  { %v2385_v23 = vpop.f32.mrb[12].mxu0 }
 0x238   :  { %v2386_v24 = vpop.f32.mrb[13].mxu0 }
 0x239   :  { %v2387_v26 = vadd.f32 %v2386_v24, %v2385_v23  ;;  %v2388_v27 = vpop.f32.mrb[14].mxu0 }
 0x23a   :  { %v2389_v28 = vpop.f32.mrb[15].mxu0 }
 0x23b   :  { %v1746_v29 = vadd.f32 %v2387_v26, %v1706_v25 }
 0x257   :  { %v1785_v30 = vpop.f32.mrb[16].mxu0 }
 0x258   :  { %v1786_v31 = vadd.f32 %v1785_v30, %v1746_v29  ;;  %v2449_v32 = vpop.f32.mrb[17].mxu0 }
 0x259   :  { %v1788_v33 = vpop.f32.mrb[18].mxu0 }
 0x25a   :  { %v2450_v34 = vpop.f32.mrb[19].mxu0  ;;  %v1793_v51 = vmax.f32 %v1786_v31, 0.0 }
 0x25c   :  { %v1796_v52 = vpack.c.bf16 %v1793_v51, %v1793_v51 }
 0x277   :  { %v1664_v37 = vpop.f32.mrb[4].mxu1 }
 0x278   :  { %v2471_v48 = vadd.f32 %v1664_v37, %v896_v35  ;;  %v1666_v38 = vpop.f32.mrb[5].mxu1 }
 0x279   :  { %v2472_v9 = vadd.f32 %v1666_v38, %v900_v36  ;;  %v1668_v39 = vpop.f32.mrb[6].mxu1 }
 0x27a   :  { %v1791_v40 = vmax.f32 %v2471_v48, 0.0  ;;  %v1669_v41 = vpop.f32.mrb[7].mxu1 }
 0x27b   :  { %v1792_v42 = vmax.f32 %v2472_v9, 0.0 }
 0x27c   :  { %v1794_v45 = vpack.c.bf16 %v1791_v40, %v1791_v40 }
 0x27d   :  { %v1795_v43 = vpack.c.bf16 %v1792_v42, %v1792_v42 }
 0x27f   :  { %2028 = vmatprep.mubr.bf16.mxu0 %v1795_v43 }
 0x280   :  { %2029 = vmatmul.mubr.bf16.vlgmr.msra.gmra.mrb[20].mxu0 %v1794_v45 }
 0x281   :  { %2452 = vmatpush3.bf16.msra.mxu0 %v2779_v44  ;;  %2467 = vmatprep.mubr.msk.bf16.mxu0 %vm2870_vm0, %v2869_v15 }
 0x282   :  { %2453 = vmatprep.subr.bf16.mxu0 %v2869_v15 }
 0x285   :  { %2454 = vmatpush3.bf16.msra.mxu0 %v2780_v7 }
 0x286   :  { %2455 = vmatprep.subr.bf16.mxu0 %v2869_v15 }
 0x289   :  { %2456 = vmatpush3.bf16.msra.mxu0 %v2781_v8 }
 0x28a   :  { %2457 = vmatprep.subr.bf16.mxu0 %v2869_v15 }
 0x28d   :  { %2458 = vmatpush3.bf16.msra.mxu0 %v2782_v10 }
 0x28e   :  { %2459 = vmatprep.subr.bf16.mxu0 %v2869_v15 }
 0x291   :  { %2460 = vmatpush3.bf16.msra.mxu0 %v2783_v46 }
 0x292   :  { %2461 = vmatprep.subr.bf16.mxu0 %v2869_v15 }
 0x295   :  { %2462 = vmatpush3.bf16.msra.mxu0 %v2784_v47 }
 0x296   :  { %2463 = vmatprep.subr.bf16.mxu0 %v2869_v15 }
 0x299   :  { %2464 = vmatpush3.bf16.msra.mxu0 %v2785_v49 }
 0x29a   :  { %2465 = vmatprep.subr.bf16.mxu0 %v2869_v15 }
 0x29d   :  { %2466 = vmatpush3.bf16.msra.mxu0 %v2786_v50 }
 0x2a0   :  { %2468 = vmatmul.mubr.bf16.vlgmr.msra.gmra.mrb[24].mxu0 %v1796_v52 }
 0x353   :  { %v2416_v53 = vpop.f32.mrb[20].mxu0 }
 0x354   :  { %v2417_v54 = vpop.f32.mrb[21].mxu0 }
 0x355   :  { %v2418_v55 = vadd.f32 %v2417_v54, %v2416_v53  ;;  %v2419_v56 = vpop.f32.mrb[22].mxu0 }
 0x356   :  { %v2420_v57 = vpop.f32.mrb[23].mxu0 }
 0x357   :  { %v2031_v59 = vadd.f32 %v2418_v55, %v2300_v58 }
 0x373   :  { %v2070_v60 = vpop.f32.mrb[24].mxu0 }
 0x374   :  { %v2071_v61 = vadd.f32 %v2070_v60, %v2031_v59  ;;  %v2469_v62 = vpop.f32.mrb[25].mxu0 }
 0x375   :  { %v2073_v63 = vpop.f32.mrb[26].mxu0 }
 0x376   :  { %v2076_v0 = vsub.f32 0.0, %v2071_v61  ;;  %v2470_v1 = vpop.f32.mrb[27].mxu0 }
 0x378   :  { %v2077_v15 = vmul.f32 1.442695, %v2076_v0 }
 0x37a   :  { %2787 = vpow2.f32 %v2077_v15 }
 0x384   :  { %v2788_v2 = vpop.eup %2787 }
 0x385   :  { %v2079_v3 = vadd.f32 1.0, %v2788_v2 }
 0x387   :  { %2789 = vrcp.f32 %v2079_v3 }
 0x391   :  { %v2790_v4 = vpop.eup %2789 }
 0x392   :  { %2083 = vst.msk [vmem:[#allocation7] sm:$0xff] %vm2082_vm1, %v2790_v4 }
 0x393   :  { %2846 = shalt.err (!%p2843_p6)
}
 0x394   :  { %s2847_s2 = scalar_lea.hbm %s3103_s7, 128 }
 0x395   :  { %p2848_p7 = scmp.ne.s32.totalorder %s3103_s7, %s2847_s2  ;;  %p2851_p8 = scmp.lt.u32.totalorder %s2847_s2, %s3103_s7 }
 0x397   :  { %p2853_p9 = pnand %p2851_p8, %p2848_p7 }
 0x399   :  { %2856 = shalt.err (!%p2853_p9)
}
 0x39a   :  { %2093 = dma.vmem_to_hbm [thread:$0]  %s2091_s30, 128, %s3103_s7, [#allocation4]  }
 0x39b   :  { %2861 = dma.done.wait [#allocation4], 128  }
 0x39c   :  { %2862 = vsyncadd [#allocation4], 4294967168 }
 0x39d   :  { %2097 = vsyncpa [#allocation3], 1 }
 0x39e   :  { %2098 = vsyncpa [#allocation6], 1 }
 0x39f   :  { %2099 = vsyncpa [#allocation4], 1 }

</bundles_post_ra>
